<compile_context>
chip_gen: v6e
topology: v6e:2x2x1
jax: 0.10.0
libtpu: 0.0.40
codegen_flags: <defaults>
</compile_context>

<pallas_src>
import functools

import jax
import jax.numpy as jnp
from jax import lax
from jax.experimental import pallas as pl
from jax.experimental.pallas import tpu as pltpu

K = 3          # ConvTranspose2d kernel_size
STRIDE = 2     # stride
PAD = 1        # padding
OUT_PAD = 1    # output_padding
EPS = 1e-5     # InstanceNorm2d default eps


def _round_up(x, m):
    return (x + m - 1) // m * m


def _expanding_block_kernel(a_ref, w_ref, o_ref, *, use_bn, cout, h, w):
    # a_ref: (1, Cin, Ppad)       bf16 zero-padded plane, lane f = m*(W+1)+n
    # w_ref: (4*Cout, 4*Cin + 1)  bf16 fused phase/tap weights + bias column
    # o_ref: (1, 4*Cout, L)       bf16 phase-major output, L = H*(W+1)
    wp = w + 1
    l = h * wp

    # Shifted views built in VMEM from the single padded plane (no wrapper-side
    # 4x materialization): flat offsets 0 / +1 / +(W+1) / +(W+2).
    plane = a_ref[0].astype(jnp.float32)                      # (Cin, Ppad)
    views = [plane[:, s:s + l] for s in (0, 1, wp, wp + 1)]   # 4 x (Cin, L)
    ones = jnp.ones((1, l), jnp.float32)                      # bias row
    a = jnp.concatenate(views + [ones], axis=0)               # (4*Cin+1, L)

    # Single fused MXU contraction: all 9 taps, 4 phases, + bias.
    y = jnp.dot(w_ref[...], a.astype(jnp.bfloat16),
                preferred_element_type=jnp.float32)           # (4*Cout, L)

    if use_bn:
        # Lanes with n == W are padding; mask them out of the stats.
        lane = lax.broadcasted_iota(jnp.int32, (1, l), 1)
        mask = ((lane % wp) < w).astype(jnp.float32)          # (1, L)
        inv_n = 1.0 / (4.0 * h * w)

        def per_channel(v4):                                  # (4C,1) -> (C,1)
            return (v4[0 * cout:1 * cout] + v4[1 * cout:2 * cout]
                    + v4[2 * cout:3 * cout] + v4[3 * cout:4 * cout])

        # Two-pass InstanceNorm2d (affine=False), all f32.
        s4 = jnp.sum(y * mask, axis=1, keepdims=True)         # (4*Cout, 1)
        mean = per_channel(s4) * inv_n                        # (Cout, 1)
        mean4 = jnp.concatenate([mean] * 4, axis=0)           # (4*Cout, 1)
        d = (y - mean4) * mask
        var = per_channel(jnp.sum(d * d, axis=1, keepdims=True)) * inv_n
        inv4 = jnp.concatenate([lax.rsqrt(var + EPS)] * 4, axis=0)
        out = (y - mean4) * inv4
    else:
        out = y

    # Single full-block ReLU + store (no per-phase partial stores).
    o_ref[0] = jnp.maximum(out, 0.0).astype(o_ref.dtype)


def _phase_weight_matrix(weight, bias):
    """PyTorch ConvTranspose2d weight (Cin, Cout, K, K), bias (Cout,) ->
    fused (4*Cout, 4*Cin + 1) block matrix.

    Row blocks are output phases p = 2*py + px (output row/col parity); column
    blocks match the in-kernel activation views [x(m,n), x(m,n+1), x(m+1,n),
    x(m+1,n+1)]; the last column is the conv bias (hits the ones row).
    """
    cin, cout = weight.shape[0], weight.shape[1]
    wt = jnp.transpose(weight, (1, 0, 2, 3))           # (Cout, Cin, K, K)
    z = jnp.zeros((cout, cin), weight.dtype)

    def t(ky, kx):
        return wt[:, :, ky, kx]                        # (Cout, Cin)

    rows = [
        jnp.concatenate([t(1, 1), z,       z,       z      ], axis=1),  # even/even
        jnp.concatenate([t(1, 2), t(1, 0), z,       z      ], axis=1),  # even/odd
        jnp.concatenate([t(2, 1), z,       t(0, 1), z      ], axis=1),  # odd/even
        jnp.concatenate([t(2, 2), t(2, 0), t(0, 2), t(0, 0)], axis=1),  # odd/odd
    ]
    w_all = jnp.concatenate(rows, axis=0)              # (4*Cout, 4*Cin)
    b_col = jnp.tile(bias, 4).reshape(4 * cout, 1)     # (4*Cout, 1)
    return jnp.concatenate([w_all, b_col], axis=1)     # (4*Cout, 4*Cin+1)


def expanding_block(x_nchw, weight, bias, *, use_bn=True):
    """weight: (Cin, Cout, K, K) as in PyTorch ConvTranspose2d; bias: (Cout,)."""
    n, cin, h, w = x_nchw.shape
    cout = cin // 2
    ho = (h - 1) * STRIDE - 2 * PAD + K + OUT_PAD      # = 2*h
    wo = (w - 1) * STRIDE - 2 * PAD + K + OUT_PAD      # = 2*w
    wp = w + 1
    l = h * wp                                         # dot / output lane count
    p = (h + 1) * wp                                   # padded plane size
    ppad = _round_up(p + 1, 128)                       # lane-dense, covers all shifts

    # The only wrapper-side input pass: zero-pad by one row/col, flatten,
    # pad to a lane-dense width and cast to bf16 (one fused XLA op).
    plane = jnp.pad(x_nchw, ((0, 0), (0, 0), (0, 1), (0, 1))).reshape(n, cin, p)
    plane = jnp.pad(plane, ((0, 0), (0, 0), (0, ppad - p))).astype(jnp.bfloat16)

    w_all = _phase_weight_matrix(weight, bias).astype(jnp.bfloat16)

    kernel = functools.partial(_expanding_block_kernel, use_bn=use_bn,
                               cout=cout, h=h, w=w)

    out_k = pl.pallas_call(
        kernel,
        out_shape=jax.ShapeDtypeStruct((n, 4 * cout, l), jnp.bfloat16),
        grid_spec=pltpu.PrefetchScalarGridSpec(
            num_scalar_prefetch=0,
            grid=(n,),
            in_specs=[
                pl.BlockSpec((1, cin, ppad), lambda i: (i, 0, 0)),
                pl.BlockSpec((4 * cout, 4 * cin + 1), lambda i: (0, 0)),
            ],
            out_specs=pl.BlockSpec((1, 4 * cout, l), lambda i: (i, 0, 0)),
        ),
        compiler_params=pltpu.CompilerParams(
            dimension_semantics=("parallel",),
            vmem_limit_bytes=32 * 1024 * 1024),
    )(plane, w_all)

    # De-phase (pixel shuffle) back to NCHW, reading bf16 (half the bytes of
    # the previous f32 version).  TODO(synk): keep the phase-major layout as
    # the inter-layer format (or fold this interleave into the kernel stores)
    # in production; it is kept only to match the module's NCHW output.
    o = out_k.reshape(n, 2, 2, cout, h, wp)[..., :w]
    o = jnp.transpose(o, (0, 3, 4, 1, 5, 2)).reshape(n, cout, ho, wo)
    return o.astype(x_nchw.dtype)


def _reference(x_nchw, weight, bias, *, use_bn=True):
    # Independent plain-JAX reference (transposed conv via lhs_dilation).
    w = jnp.transpose(weight, (1, 0, 2, 3))[:, :, ::-1, ::-1]  # (Cout, Cin, K, K)
    y = lax.conv_general_dilated(
        x_nchw, w, window_strides=(1, 1),
        padding=((K - 1 - PAD, K - 1 - PAD + OUT_PAD),) * 2,
        lhs_dilation=(STRIDE, STRIDE),
        dimension_numbers=('NCHW', 'OIHW', 'NCHW'),
        precision=lax.Precision.HIGHEST)
    y = y + bias.reshape(1, -1, 1, 1)
    if use_bn:
        mean = jnp.mean(y, axis=(2, 3), keepdims=True)
        var = jnp.mean(jnp.square(y - mean), axis=(2, 3), keepdims=True)
        y = (y - mean) * lax.rsqrt(var + EPS)
    return jnp.maximum(y, 0.0)


if __name__ == "__main__":
    key = jax.random.PRNGKey(0)
    kx, kw, kb = jax.random.split(key, 3)

    N, CIN, H, W = 2, 4, 16, 16
    COUT = CIN // 2

    x = jax.random.normal(kx, (N, CIN, H, W), jnp.float32)
    # Deterministic parameter init (synthetic; shapes match nn.ConvTranspose2d).
    fan = CIN * K * K
    bound = 1.0 / (fan ** 0.5)
    weight = jax.random.uniform(kw, (CIN, COUT, K, K), jnp.float32, -bound, bound)
    bias = jax.random.uniform(kb, (COUT,), jnp.float32, -bound, bound)

    def bf16_round(a):
        return a.astype(jnp.bfloat16).astype(jnp.float32)

    for use_bn in (True, False):
        out = jax.block_until_ready(
            expanding_block(x, weight, bias, use_bn=use_bn))
        assert out.shape == (N, COUT, 2 * H, 2 * W), out.shape
        # Kernel computes from bf16 inputs and stores bf16; compare against an
        # f32 reference built from the same bf16-rounded inputs.
        ref = _reference(bf16_round(x), bf16_round(weight), bf16_round(bias),
                         use_bn=use_bn)
        max_err = float(jnp.max(jnp.abs(out - ref)))
        assert max_err < 5e-2, (use_bn, max_err)

    print("KERNEL_OK")
</pallas_src>

<mosaic_0001>
module attributes {stable_mosaic.version = 11 : i64} {
  func.func @_expanding_block_kernel(%arg0: i32, %arg1: memref<1x4x384xbf16, #tpu.memory_space<vmem>>, %arg2: memref<8x17xbf16, #tpu.memory_space<vmem>>, %arg3: memref<1x8x272xbf16, #tpu.memory_space<vmem>>) attributes {dimension_semantics = [#tpu.dimension_semantics<parallel>], iteration_bounds = array<i64: 2>, scalar_prefetch = 0 : i64, scratch_operands = 0 : i64, tpu.core_type = #tpu.core_type<tc>, window_params = [{transform_indices = @transform_0, window_bounds = array<i64: 1, 4, 384>}, {pipeline_mode = #tpu.pipeline_mode<synchronous>, transform_indices = @transform_1, window_bounds = array<i64: 8, 17>}, {transform_indices = @transform_2, window_bounds = array<i64: 1, 8, 272>}]} {
    %c0 = arith.constant 0 : index
    %c0_0 = arith.constant 0 : index
    %c0_1 = arith.constant 0 : index
    %0 = vector.load %arg1[%c0, %c0_0, %c0_1] : memref<1x4x384xbf16, #tpu.memory_space<vmem>>, vector<1x4x384xbf16>
    %1 = vector.shape_cast %0 : vector<1x4x384xbf16> to vector<4x384xbf16>
    %2 = arith.extf %1 : vector<4x384xbf16> to vector<4x384xf32>
    %3 = vector.extract_strided_slice %2 {offsets = [0, 0], sizes = [4, 272], strides = [1, 1]} : vector<4x384xf32> to vector<4x272xf32>
    %4 = vector.extract_strided_slice %2 {offsets = [0, 1], sizes = [4, 272], strides = [1, 1]} : vector<4x384xf32> to vector<4x272xf32>
    %5 = vector.extract_strided_slice %2 {offsets = [0, 17], sizes = [4, 272], strides = [1, 1]} : vector<4x384xf32> to vector<4x272xf32>
    %6 = vector.extract_strided_slice %2 {offsets = [0, 18], sizes = [4, 272], strides = [1, 1]} : vector<4x384xf32> to vector<4x272xf32>
    %cst = arith.constant 1.000000e+00 : f32
    %7 = vector.broadcast %cst : f32 to vector<1x272xf32>
    %8 = tpu.concatenate %3, %4, %5, %6, %7 in 0 : vector<4x272xf32>, vector<4x272xf32>, vector<4x272xf32>, vector<4x272xf32>, vector<1x272xf32> -> vector<17x272xf32>
    %c0_2 = arith.constant 0 : index
    %c0_3 = arith.constant 0 : index
    %9 = vector.load %arg2[%c0_2, %c0_3] : memref<8x17xbf16, #tpu.memory_space<vmem>>, vector<8x17xbf16>
    %10 = arith.truncf %8 : vector<17x272xf32> to vector<17x272xbf16>
    %cst_4 = arith.constant dense<0.000000e+00> : vector<8x272xf32>
    %11 = tpu.matmul %9, %10, %cst_4 {dimension_numbers = #tpu.dot_dimension_numbers<[1], [0], [0], [1], [0, 0, 1, 1], [], []>} : vector<8x17xbf16>, vector<17x272xbf16>, vector<8x272xf32> -> vector<8x272xf32>
    %12 = tpu.iota {dimensions = array<i32: 1>} : vector<1x272xi32>
    %c17_i32 = arith.constant 17 : i32
    %c0_i32 = arith.constant 0 : i32
    %13 = arith.cmpi eq, %c17_i32, %c0_i32 : i32
    %c1_i32 = arith.constant 1 : i32
    %14 = arith.select %13, %c1_i32, %c17_i32 : i32
    %15 = vector.broadcast %14 : i32 to vector<1x272xi32>
    %16 = arith.remsi %12, %15 : vector<1x272xi32>
    %c0_i32_5 = arith.constant 0 : i32
    %17 = vector.broadcast %c0_i32_5 : i32 to vector<1x272xi32>
    %18 = arith.cmpi ne, %16, %17 : vector<1x272xi32>
    %c0_i32_6 = arith.constant 0 : i32
    %19 = vector.broadcast %c0_i32_6 : i32 to vector<1x272xi32>
    %20 = arith.cmpi slt, %16, %19 : vector<1x272xi32>
    %c0_i32_7 = arith.constant 0 : i32
    %21 = arith.cmpi slt, %14, %c0_i32_7 : i32
    %22 = vector.broadcast %21 : i1 to vector<1x272xi1>
    %23 = vector.broadcast %22 : vector<1x272xi1> to vector<1x272xi1>
    %24 = arith.xori %20, %23 : vector<1x272xi1>
    %25 = arith.andi %24, %18 : vector<1x272xi1>
    %26 = vector.broadcast %14 : i32 to vector<1x272xi32>
    %27 = arith.addi %16, %26 : vector<1x272xi32>
    %28 = arith.select %25, %27, %16 : vector<1x272xi1>, vector<1x272xi32>
    %c16_i32 = arith.constant 16 : i32
    %29 = vector.broadcast %c16_i32 : i32 to vector<1x272xi32>
    %30 = arith.cmpi slt, %28, %29 : vector<1x272xi32>
    %31 = arith.extui %30 : vector<1x272xi1> to vector<1x272xi32>
    %32 = arith.sitofp %31 : vector<1x272xi32> to vector<1x272xf32>
    %33 = vector.broadcast %32 : vector<1x272xf32> to vector<8x272xf32>
    %34 = arith.mulf %11, %33 : vector<8x272xf32>
    %cst_8 = arith.constant dense<0.000000e+00> : vector<8xf32>
    %35 = vector.multi_reduction <add>, %34, %cst_8 [1] : vector<8x272xf32> to vector<8xf32>
    %36 = vector.shape_cast %35 : vector<8xf32> to vector<8x1xf32>
    %37 = vector.extract_strided_slice %36 {offsets = [0, 0], sizes = [2, 1], strides = [1, 1]} : vector<8x1xf32> to vector<2x1xf32>
    %38 = vector.extract_strided_slice %36 {offsets = [2, 0], sizes = [2, 1], strides = [1, 1]} : vector<8x1xf32> to vector<2x1xf32>
    %39 = arith.addf %37, %38 : vector<2x1xf32>
    %40 = vector.extract_strided_slice %36 {offsets = [4, 0], sizes = [2, 1], strides = [1, 1]} : vector<8x1xf32> to vector<2x1xf32>
    %41 = arith.addf %39, %40 : vector<2x1xf32>
    %42 = vector.extract_strided_slice %36 {offsets = [6, 0], sizes = [2, 1], strides = [1, 1]} : vector<8x1xf32> to vector<2x1xf32>
    %43 = arith.addf %41, %42 : vector<2x1xf32>
    %cst_9 = arith.constant 9.765625E-4 : f32
    %44 = vector.broadcast %cst_9 : f32 to vector<2x1xf32>
    %45 = arith.mulf %43, %44 : vector<2x1xf32>
    %46 = tpu.concatenate %45, %45, %45, %45 in 0 : vector<2x1xf32>, vector<2x1xf32>, vector<2x1xf32>, vector<2x1xf32> -> vector<8x1xf32>
    %47 = vector.broadcast %46 : vector<8x1xf32> to vector<8x272xf32>
    %48 = arith.subf %11, %47 : vector<8x272xf32>
    %49 = vector.broadcast %32 : vector<1x272xf32> to vector<8x272xf32>
    %50 = arith.mulf %48, %49 : vector<8x272xf32>
    %51 = arith.mulf %50, %50 : vector<8x272xf32>
    %cst_10 = arith.constant dense<0.000000e+00> : vector<8xf32>
    %52 = vector.multi_reduction <add>, %51, %cst_10 [1] : vector<8x272xf32> to vector<8xf32>
    %53 = vector.shape_cast %52 : vector<8xf32> to vector<8x1xf32>
    %54 = vector.extract_strided_slice %53 {offsets = [0, 0], sizes = [2, 1], strides = [1, 1]} : vector<8x1xf32> to vector<2x1xf32>
    %55 = vector.extract_strided_slice %53 {offsets = [2, 0], sizes = [2, 1], strides = [1, 1]} : vector<8x1xf32> to vector<2x1xf32>
    %56 = arith.addf %54, %55 : vector<2x1xf32>
    %57 = vector.extract_strided_slice %53 {offsets = [4, 0], sizes = [2, 1], strides = [1, 1]} : vector<8x1xf32> to vector<2x1xf32>
    %58 = arith.addf %56, %57 : vector<2x1xf32>
    %59 = vector.extract_strided_slice %53 {offsets = [6, 0], sizes = [2, 1], strides = [1, 1]} : vector<8x1xf32> to vector<2x1xf32>
    %60 = arith.addf %58, %59 : vector<2x1xf32>
    %cst_11 = arith.constant 9.765625E-4 : f32
    %61 = vector.broadcast %cst_11 : f32 to vector<2x1xf32>
    %62 = arith.mulf %60, %61 : vector<2x1xf32>
    %cst_12 = arith.constant 9.99999974E-6 : f32
    %63 = vector.broadcast %cst_12 : f32 to vector<2x1xf32>
    %64 = arith.addf %62, %63 : vector<2x1xf32>
    %65 = math.rsqrt %64 : vector<2x1xf32>
    %66 = tpu.concatenate %65, %65, %65, %65 in 0 : vector<2x1xf32>, vector<2x1xf32>, vector<2x1xf32>, vector<2x1xf32> -> vector<8x1xf32>
    %67 = vector.broadcast %46 : vector<8x1xf32> to vector<8x272xf32>
    %68 = arith.subf %11, %67 : vector<8x272xf32>
    %69 = vector.broadcast %66 : vector<8x1xf32> to vector<8x272xf32>
    %70 = arith.mulf %68, %69 : vector<8x272xf32>
    %cst_13 = arith.constant 0.000000e+00 : f32
    %71 = vector.broadcast %cst_13 : f32 to vector<8x272xf32>
    %72 = arith.maximumf %70, %71 : vector<8x272xf32>
    %73 = arith.truncf %72 : vector<8x272xf32> to vector<8x272xbf16>
    %c0_14 = arith.constant 0 : index
    %c0_15 = arith.constant 0 : index
    %c0_16 = arith.constant 0 : index
    %74 = vector.load %arg3[%c0_14, %c0_15, %c0_16] : memref<1x8x272xbf16, #tpu.memory_space<vmem>>, vector<1x8x272xbf16>
    %75 = vector.shape_cast %74 : vector<1x8x272xbf16> to vector<8x272xbf16>
    %76 = vector.shape_cast %73 : vector<8x272xbf16> to vector<1x8x272xbf16>
    tpu.vector_store %arg3[%c0_14, %c0_15, %c0_16], %76 {strides = array<i32>} : memref<1x8x272xbf16, #tpu.memory_space<vmem>>, vector<1x8x272xbf16>,
    return
  }
  func.func @transform_0(%arg0: i32) -> (i32, i32, i32) {
    %c0_i32 = arith.constant 0 : i32
    %c0_i32_0 = arith.constant 0 : i32
    %c0_i32_1 = arith.constant 0 : i32
    return %arg0, %c0_i32, %c0_i32_0 : i32, i32, i32
  }
  func.func @transform_1(%arg0: i32) -> (i32, i32) {
    %c0_i32 = arith.constant 0 : i32
    %c0_i32_0 = arith.constant 0 : i32
    %c0_i32_1 = arith.constant 0 : i32
    return %c0_i32, %c0_i32_0 : i32, i32
  }
  func.func @transform_2(%arg0: i32) -> (i32, i32, i32) {
    %c0_i32 = arith.constant 0 : i32
    %c0_i32_0 = arith.constant 0 : i32
    %c0_i32_1 = arith.constant 0 : i32
    return %arg0, %c0_i32, %c0_i32_0 : i32, i32, i32
  }
}

</mosaic_0001>

<bundles_post_ra>
// kernel: tpu_custom_call.1
= control target key start
LH: loop header
LB: loop body
LE: loop exit
PB: predicated region body
PF: predicated region fallthrough
CT: control target
= control target key end

     0   :  { %7 = vsyncpa [#allocation3], 0  ;;  %s1057_s0 = inlined_call_operand.hbm [shape: bf16[2,4,384], index: 0, kind: input, shape index: {}]   ;;  %s1058_s1 = inlined_call_operand.hbm [shape: bf16[8,17], index: 1, kind: input, shape index: {}]   ;;  %s1059_s2 = inlined_call_operand.hbm [shape: bf16[2,8,272], index: 2, kind: output, shape index: {}]  }
   0x1   :  { %9 = vsyncpa [#allocation3 + $0x1], 0 }
   0x2   :  { %10 = vsyncpa [#allocation6], 0 }
   0x3   :  { %11 = vsyncpa [#allocation4], 0 }
   0x4   :  { %13 = vsyncpa [#allocation4 + $0x1], 0  ;;  %s850_s9 = smov 0   ;;  %s852_s10 = smov 0  }
   0x5   :  { %s854_s11 = smov 0   ;;  %s856_s12 = smov 0  }
   0x6 LB: > { %s871_s13 = sadd.s32 4294967295, %s824_s12   ;;  %s579_s14 = sadd.s32 4294967294, %s824_s12   ;;  %s824_s12 = sphi %s856_s12, %s1082_s12   ;;  %s820_s11 = sphi %s854_s11, %s1081_s11   ;;  %s816_s10 = sphi %s852_s10, %s1080_s10   ;;  %s812_s9 = sphi %s850_s9, %s1079_s9  }
   0x7   : > { %p39_p0 = scmp.ne.s32.totalorder %s816_s10, %s812_s9  ;;  %p1060_p1 = scmp.eq.s32.totalorder %s871_s13, 0 }
   0x8   : > { %p90_p3 = scmp.eq.s32.totalorder %s579_s14, 1  ;;  %p580_p5 = scmp.ge.s32.totalorder %s824_s12, 1 }
   0x9   : > { %p880_p4 = por %p1060_p1, %p39_p0  ;;  %p97_p7 = scmp.lt.s32.totalorder %s824_s12, 3 }
   0xa   : > { %p885_p6 = por %p90_p3, %p39_p0  ;;  %s826_s18 = smov [#allocation5]  }
   0xb   : > { %s1064_s15 = scalar_select %p880_p4, 1, 0 }
   0xc   : > { %s1065_s16 = scalar_select %p885_p6, 1, 0 }
   0xd   : > { %p890_p8 = pnand %p580_p5, %p97_p7  ;;  %s110_s19 = sshll.u32 %s826_s18, 4  ;;  %s111_s19 = int_to_ptr.vmem [resolvable:$true] %s110_s19 }
   0xe   : > { %s898_s20 = sadd.s32 1, %s824_s12   ;;  %s26_s24 = sadd.s32 1, %s820_s11 }
   0xf   : > { %s1066_s17 = scalar_select %p890_p8, 1, 0 }
  0x10   : > { %p628_p10 = pneg %p890_p8  ;;  %s23_s22 = ssub.s32 %s824_s12, %s898_s20 }
  0x11   : > { %p908_p12 = scmp.eq.s32.totalorder %s23_s22, 0  ;;  %p33_p13 = scmp.ne.s32.totalorder %s820_s11, %s816_s10 }
  0x12   : > { %p902_p11 = pnand %p628_p10, %p1060_p1  ;;  %s713_s25 = scalar_lea.vmem %s111_s19, 64 }
  0x13   : > { %p714_p3 = scmp.ne.s32.totalorder %s111_s19, %s713_s25  ;;  %p721_p9 = scmp.lt.s32.totalorder %s111_s19, %s111_s19 }
  0x14   : > { %p704_p0 = pneg %p902_p11  ;;  %p722_p2 = scmp.lt.s32.totalorder %s713_s25, %s713_s25 }
  0x16   : > { %p716_p5 = pnand %p714_p3, %p704_p0  ;;  %p723_p10 = por %p722_p2, %p721_p9 }
  0x18   : > { %p717_p7 = pneg %p716_p5 }
  0x1a   : > { %p724_p1 = pnand %p723_p10, %p717_p7 }
  0x1c   : > { %727 = shalt.err (!%p724_p1)
}
  0x1d   : > { %631 = dma.hbm_to_vmem [thread:$0]  (!%p902_p11), %s1058_s1, 64, %s111_s19, [#allocation6]  }
  0x1e   : > { %s925_s28 = scalar_select %p908_p12, %s820_s11, %s26_s24  }
  0x1f   : > { %p34_p1 = scmp.eq.s32.totalorder %s824_s12, 0  ;;  %p1069_p2 = scmp.eq.s32.totalorder %s871_s13, 1 }
  0x20   : > { %p641_p0 = scmp.lt.s32.totalorder %s824_s12, 2  ;;  %s121_s30 = sand.u32 1, %s820_s11  }
  0x21   : > { %p933_p9 = por %p1069_p2, %p33_p13  ;;  %p35_p3 = por %p34_p1, %p33_p13 }
  0x22   : > { %s609_s3 = smul.u32 6, %s121_s30  ;;  %s122_s19 = scalar_lea.sflag [#allocation3], %s121_s30 }
  0x23   : > { %s1070_s29 = scalar_select %p933_p9, 1, 0 }
  0x24   : > { %s610_s4 = smul.u32 96, %s824_s12  ;;  %p943_p5 = pnand %p641_p0, %p35_p3 }
  0x25   : > { %s125_s14 = scalar_lea.vmem [#allocation2], %s609_s3  ;;  %s733_s24 = scalar_lea.hbm %s1057_s0, 192 }
  0x26   : > { %s950_s8 = scalar_lea.hbm %s1057_s0, %s610_s4  ;;  %s133_s18 = sshll.u32 %s125_s14, 4  ;;  %s134_s18 = int_to_ptr.vmem [resolvable:$true] %s133_s18 }
  0x27   : > { %s728_s21 = scalar_lea.hbm %s950_s8, 96  ;;  %p730_p12 = pneg %p943_p5 }
  0x28   : > { %p729_p11 = scmp.ne.s32.totalorder %s950_s8, %s728_s21  ;;  %p734_p10 = scmp.lt.s32.totalorder %s950_s8, %s1057_s0 }
  0x29   : > { %p735_p1 = scmp.lt.s32.totalorder %s733_s24, %s728_s21 }
  0x2a   : > { %p731_p13 = pnand %p730_p12, %p729_p11 }
  0x2b   : > { %p736_p2 = por %p735_p1, %p734_p10 }
  0x2c   : > { %p732_p7 = pneg %p731_p13 }
  0x2e   : > { %p737_p0 = pnand %p736_p2, %p732_p7 }
  0x30   : > { %740 = shalt.err (!%p737_p0)
}
  0x31   : > { %s741_s27 = scalar_lea.vmem %s134_s18, 96  ;;  %s827_s30 = smov [#allocation2]  }
  0x32   : > { %p742_p3 = scmp.ne.s32.totalorder %s134_s18, %s741_s27  ;;  %s746_s3 = sshll.u32 %s827_s30, 4  ;;  %s747_s3 = int_to_ptr.vmem [resolvable:$false] %s746_s3 }
  0x33   : > { %s748_s4 = scalar_lea.vmem %s747_s3, 192  ;;  %p749_p11 = scmp.lt.s32.totalorder %s134_s18, %s747_s3 }
  0x34   : > { %p744_p6 = pnand %p742_p3, %p730_p12  ;;  %p750_p13 = scmp.lt.s32.totalorder %s748_s4, %s741_s27 }
  0x36   : > { %p745_p9 = pneg %p744_p6  ;;  %p751_p4 = por %p750_p13, %p749_p11 }
  0x38   : > { %p752_p8 = pnand %p751_p4, %p745_p9 }
  0x3a   : > { %755 = shalt.err (!%p752_p8)
}
  0x3b   : > { %635 = dma.hbm_to_vmem [thread:$0]  (!%p943_p5), %s950_s8, 96, %s134_s18, %s122_s19  }
  0x3c   : > { %p1072_p7 = scmp.ne.s32.totalorder %s1066_s17, 0 }
  0x3d   : > { %s969_s6 = sand.u32 (!%p1072_p7), 1, %s816_s10   ;;  %p1073_p6 = scmp.ne.s32.totalorder (!%p1072_p7), %s1064_s15, 0 }
  0x3e   : > { %142 = sbr.rel (%p1072_p7) target bundleno = 1008 (0x3f0), region = 28  ;;  %s145_s14 = scalar_lea.sflag (!%p1072_p7), [#allocation3], %s969_s6 }
  0x3f   : > { %s611_s7 = smul.u32 (!%p1072_p7), 6, %s969_s6 }
  0x41   : > { %s148_s21 = scalar_lea.vmem (!%p1072_p7), [#allocation2], %s611_s7 }
  0x43   : > { %799 = dma.done.wait (%p1073_p6), %s145_s14, 96  }
  0x44   : > { %801 = vsyncadd (%p1073_p6), %s145_s14, 4294967200  ;;  %p1074_p4 = scmp.eq.s32.totalorder %s871_s13, 0 }
  0x46   : > { %803 = dma.done.wait (%p1074_p4), [#allocation6], 64   ;;  %p1075_p8 = pmov %p1074_p4 }
  0x47   : > { %vm235_vm0 = vcmask 1040384   ;;  %v828_v0 = vmov 0   ;;  %v829_v3 = vmov 0.0   ;;  %v174_v4 = vld [vmem:[%s148_s21] sm:$0x3f]  ;;  %vm830_vm1 = vmmov 0  }
  0x48   : > { %805 = vsyncadd (%p1075_p8), [#allocation6], 4294967232  ;;  %v237_v1 = vsel %vm235_vm0, 65535, %v828_v0  ;;  %273 = vmatprep.mubr.bf16.mxu0 %v828_v0  ;;  %698 = vset.pattern.permute.xlu1 %v828_v0  ;;  %v175_v5 = vunpack.c.l.bf16 %v174_v4  ;;  %v176_v6 = vunpack.c.h.bf16 %v174_v4  ;;  %s831_s15 = smov 110   ;;  %s832_s17 = smov 127   ;;  %vm189_vm2 = vcmask 1039360  }
  0x49   : > { %v239_v2 = vand.u32 1.0|1.0, %v237_v1  ;;  %699 = vset.pattern.permute.xlu0 %v828_v0  ;;  %601 = vmatprep.subr.bf16.mxu1 %v829_v3  ;;  %s833_s5 = smov 111   ;;  %vm213_vm3 = vcmask 900096   ;;  %vm219_vm4 = vcmask 1043456   ;;  %vm201_vm5 = vcmask 908288  }
  0x4a   : > { %v182_v7 = vcombine.low %v176_v6, %v176_v6  ;;  %v179_v8 = vcombine.high %v175_v5, %v175_v5  ;;  %605 = vmatprep.mubr.msk.bf16.mxu1 %vm830_vm1, %v829_v3  ;;  %v181_v10 = vcombine.low %v175_v5, %v175_v5  ;;  %v226_v38 = vld [vmem:[#allocation5] sm:$0xf]  ;;  %vm231_vm6 = vcmask 138240   ;;  %s612_s8 = smul.u32 12, %s969_s6  ;;  %s485_s26 = scalar_lea.sflag [#allocation4], %s969_s6 }
  0x4b   : > { %602 = vmatpush3.bf16.msra.mxu1 %v239_v2  ;;  %253 = vmatprep.subr.bf16.mxu0 %v239_v2  ;;  %v322_v40 = vlaneseq  ;;  %s619_s18 = smul.u32 192, %s871_s13  ;;  %p1076_p5 = scmp.ne.s32.totalorder %s1070_s29, 0 }
  0x4c   : > { %254 = vmatpush1.bf16.msra.mxu0 %v239_v2  ;;  %603 = vmatprep.subr.bf16.mxu1 %v829_v3  ;;  %v693_v9 = vpack.i.bf16 %v182_v7, %v175_v5  ;;  %v688_v11 = vpack.i.bf16 %v176_v6, %v179_v8  ;;  %s172_s19 = scalar_lea.vmem [#allocation7], %s612_s8  ;;  %s834_s13 = smov [#allocation7]  }
  0x4d   : > { %v323_v41 = vand.u32 127, %v322_v40  ;;  %s499_s22 = sshll.u32 %s172_s19, 4  ;;  %s1020_s25 = scalar_lea.hbm %s1059_s2, %s619_s18  ;;  %s500_s22 = int_to_ptr.vmem [resolvable:$true] %s499_s22 }
  0x4e   : > { %694 = vrot.lane.b32.xlu1 %v693_v9, %s831_s15  ;;  %684 = vrot.lane.b32.xlu0 %v693_v9, %s832_s17  ;;  %s756_s27 = scalar_lea.vmem %s500_s22, 192  ;;  %s760_s30 = sshll.u32 %s834_s13, 4  ;;  %s761_s30 = int_to_ptr.vmem [resolvable:$false] %s760_s30 }
  0x4f   : > { %v325_v42 = vadd.s32 256, %v323_v41  ;;  %v324_v43 = vadd.s32 128, %v323_v41  ;;  %v995_v46 = vmul.u32.u64.low 4042322161, %v323_v41  ;;  %v996_v47 = vmul.u32.u64.high 4042322161, %v323_v41, %v995_v46  ;;  %p757_p9 = scmp.ne.s32.totalorder %s500_s22, %s756_s27  ;;  %s762_s3 = scalar_lea.vmem %s761_s30, 384 }
  0x50   : > { %p763_p1 = scmp.lt.s32.totalorder %s500_s22, %s761_s30  ;;  %p764_p2 = scmp.lt.s32.totalorder %s762_s3, %s756_s27 }
  0x51   : > { %v992_v44 = vmul.u32.u64.low 4042322161, %v325_v42  ;;  %v993_v45 = vmul.u32.u64.high 4042322161, %v325_v42, %v992_v44  ;;  %v998_v48 = vmul.u32.u64.low 4042322161, %v324_v43  ;;  %v999_v49 = vmul.u32.u64.high 4042322161, %v324_v43, %v998_v48  ;;  %p758_p12 = pnand %p757_p9, %p1076_p5 }
  0x52   : > { %183 = vrot.lane.b32.xlu1 %v181_v10, %s832_s17  ;;  %689 = vrot.lane.b32.xlu0 %v688_v11, %s833_s5  ;;  %v332_v51 = vshrl.u32 %v996_v47, 4  ;;  %p765_p0 = por %p764_p2, %p763_p1 }
  0x53   : > { %v354_v50 = vshrl.u32 %v993_v45, 4  ;;  %v343_v52 = vshrl.u32 %v999_v49, 4  ;;  %p759_p10 = pneg %p758_p12 }
  0x54   : > { %v333_v54 = vmul.u32 17, %v332_v51 }
  0x55   : > { %v355_v53 = vmul.u32 17, %v354_v50  ;;  %v344_v55 = vmul.u32 17, %v343_v52  ;;  %p766_p3 = pnand %p765_p0, %p759_p10 }
  0x56   : > { %207 = vrot.lane.b32.xlu1 %v181_v10, %s831_s15  ;;  %195 = vrot.lane.b32.xlu0 %v175_v5, %s833_s5  ;;  %v334_v57 = vsub.s32 %v323_v41, %v333_v54 }
  0x57   : > { %v356_v56 = vsub.s32 %v325_v42, %v355_v53  ;;  %v345_v58 = vsub.s32 %v324_v43, %v344_v55 }
  0x58   : > { %vm359_vm9 = vcmp.ne.s32.totalorder %v334_v57, 0  ;;  %vm362_vm10 = vcmp.lt.s32.totalorder %v334_v57, 0  ;;  %v368_v60 = vadd.s32 17, %v334_v57 }
  0x59   : > { %vm361_vm7 = vcmp.ne.s32.totalorder %v356_v56, 0  ;;  %vm364_vm8 = vcmp.lt.s32.totalorder %v356_v56, 0  ;;  %v370_v59 = vadd.s32 17, %v356_v56  ;;  %vm360_vm12 = vcmp.ne.s32.totalorder %v345_v58, 0  ;;  %vm365_vm14 = vmand %vm362_vm10, %vm359_vm9 }
  0x5a   : > { %vm367_vm11 = vmand %vm364_vm8, %vm361_vm7  ;;  %vm363_vm13 = vcmp.lt.s32.totalorder %v345_v58, 0  ;;  %v369_v61 = vadd.s32 17, %v345_v58  ;;  %v371_v63 = vsel %vm365_vm14, %v368_v60, %v334_v57  ;;  %vm482_vm7 = vcmask 125952  }
  0x5b   : > { %v373_v62 = vsel %vm367_vm11, %v370_v59, %v356_v56  ;;  %vm366_vm15 = vmand %vm363_vm13, %vm360_vm12  ;;  %vm374_vm1 = vcmp.lt.s32.totalorder %v371_v63, 16 }
  0x5c   : > { %vm376_vm0 = vcmp.lt.s32.totalorder %v373_v62, 16  ;;  %v372_v0 = vsel %vm366_vm15, %v369_v61, %v345_v58  ;;  %v588_v7 = vsel %vm374_vm1, 1.0, %v829_v3 }
  0x5d   : > { %v590_v2 = vsel %vm376_vm0, 1.0, %v829_v3 }
  0xc0   : > { %v695_v12 = vpop.permute.xlu1 %694  ;;  %v685_v13 = vpop.permute.xlu0 %684 }
  0xc1   : > { %v687_v14 = vunpack.i.h.bf16 %v685_v13  ;;  %v686_v15 = vunpack.i.l.bf16 %v685_v13  ;;  %v697_v16 = vunpack.i.h.bf16 %v695_v12  ;;  %v696_v17 = vunpack.i.l.bf16 %v695_v12 }
  0xc3   : > { %v191_v20 = vsel %vm189_vm2, %v686_v15, %v687_v14  ;;  %v215_v23 = vsel %vm213_vm3, %v696_v17, %v697_v16  ;;  %v222_v26 = vsel %vm219_vm4, %v176_v6, %v687_v14 }
  0xc4   : > { %v184_v18 = vpop.permute.xlu1 %183  ;;  %v690_v19 = vpop.permute.xlu0 %689  ;;  %v221_v31 = vsel %vm219_vm4, %v179_v8, %v191_v20 }
  0xc5   : > { %v692_v21 = vunpack.i.h.bf16 %v690_v19  ;;  %v691_v22 = vunpack.i.l.bf16 %v690_v19  ;;  %v190_v24 = vsel %vm189_vm2, %v184_v18, %v686_v15  ;;  %vm375_vm2 = vcmp.lt.s32.totalorder %v372_v0, 16 }
  0xc6   : > { %v220_v36 = vsel %vm219_vm4, %v175_v5, %v190_v24  ;;  %v589_v8 = vsel %vm375_vm2, 1.0, %v829_v3 }
  0xc7   : > { %v203_v25 = vsel %vm201_vm5, %v691_v22, %v692_v21  ;;  %v225_v27 = vsel %vm219_vm4, %v692_v21, %v697_v16 }
  0xc8   : > { %v208_v28 = vpop.permute.xlu1 %207  ;;  %v196_v29 = vpop.permute.xlu0 %195  ;;  %v229_v30 = vpack.c.bf16 %v225_v27, %v222_v26  ;;  %v224_v32 = vsel %vm219_vm4, %v203_v25, %v215_v23 }
  0xc9   : > { %v214_v33 = vsel %vm213_vm3, %v208_v28, %v696_v17  ;;  %v202_v34 = vsel %vm201_vm5, %v196_v29, %v691_v22  ;;  %v228_v35 = vpack.c.bf16 %v224_v32, %v221_v31  ;;  %vm387_vm3 = vcmask 130048  }
  0xca   : > { %v223_v37 = vsel %vm219_vm4, %v202_v34, %v214_v33  ;;  %604 = vmatpush3.bf16.msra.mxu1 %v229_v30  ;;  %vm410_vm5 = vcmask 1041408  }
  0xcb   : > { %255 = vmatprep.subr.bf16.mxu0 %v228_v35  ;;  %v227_v39 = vpack.c.bf16 %v223_v37, %v220_v36 }
  0xcd   : > { %256 = vmatpush1.bf16.msra.mxu0 %v227_v39  ;;  %606 = vmatmul.mubr.msk.bf16.vlgmr.msra.gmra.mxu1 %vm231_vm6, %v226_v38 }
  0xd0   : > { %586 = vmatmul.mubr.msk.bf16.vlgmr.msra.gmra.mxu0 %vm231_vm6, %v226_v38  ;;  %vm413_vm6 = vcmask 1045504  }
 0x18d   : > { %v316_v1 = vpop.f32.mrf.mxu1 }
 0x18e   : > { %v385_v5 = vmul.f32 %v590_v2, %v316_v1 }
 0x18f   : > { %v607_v4 = vpop.f32.mrf.mxu1 }
 0x190   : > { %v275_v6 = vpop.f32.mrf.mxu0  ;;  %v388_v15 = vsel %vm387_vm3, %v385_v5, 0.0 }
 0x191   : > { %v319_v9 = vpop.f32.mrf.mxu1  ;;  %v383_v11 = vmul.f32 %v588_v7, %v275_v6 }
 0x192   : > { %v277_v10 = vpop.f32.mrf.mxu0 }
 0x193   : > { %v384_v12 = vmul.f32 %v589_v8, %v277_v10  ;;  %v608_v13 = vpop.f32.mrf.mxu1 }
 0x194   : > { %v279_v14 = vpop.f32.mrf.mxu0 }
 0x195   : > { %v386_v16 = vadd.f32 %v384_v12, %v383_v11 }
 0x196   : > { %v280_v17 = vpop.f32.mrf.mxu0 }
 0x197   : > { %v389_v18 = vadd.f32 %v388_v15, %v386_v16 }
 0x199   : > { %390 = vadd.xlane.f32.xlu0 %v389_v18 }
 0x222   : > { %v391_v19 = vpop.xlane.xlu0 %390 }
 0x223   : > { %v393_v20 = vrot.slane %v391_v19, 2  ;;  %v396_v22 = vrot.slane %v391_v19, 4  ;;  %v399_v24 = vrot.slane %v391_v19, 6 }
 0x225   : > { %v395_v21 = vadd.f32 %v393_v20, %v391_v19 }
 0x227   : > { %v398_v23 = vadd.f32 %v396_v22, %v395_v21 }
 0x229   : > { %v401_v3 = vadd.f32 %v399_v24, %v398_v23 }
 0x22b   : > { %v402_v25 = vmul.f32 0.0009765625, %v401_v3 }
 0x22d   : > { %v404_v26 = vrot.slane %v402_v25, 6  ;;  %v406_v27 = vrot.slane %v402_v25, 4  ;;  %v408_v28 = vrot.slane %v402_v25, 2 }
 0x22f   : > { %v411_v29 = vsel %vm410_vm5, %v402_v25, %v404_v26 }
 0x230   : > { %v412_v30 = vsel %vm219_vm4, %v411_v29, %v406_v27 }
 0x231   : > { %v414_v31 = vsel %vm413_vm6, %v412_v30, %v408_v28 }
 0x232   : > { %417 = vperm.xlu1 %698, %v414_v31  }
 0x2ad   : > { %v418_v32 = vpop.permute.xlu1 %417 }
 0x2ae   : > { %v420_v33 = vsub.f32 %v275_v6, %v418_v32  ;;  %v421_v34 = vsub.f32 %v277_v10, %v418_v32  ;;  %v422_v35 = vsub.f32 %v316_v1, %v418_v32 }
 0x2b0   : > { %v423_v36 = vmul.f32 %v588_v7, %v420_v33  ;;  %v424_v37 = vmul.f32 %v589_v8, %v421_v34  ;;  %v425_v38 = vmul.f32 %v590_v2, %v422_v35 }
 0x2b2   : > { %v426_v39 = vmul.f32 %v423_v36, %v423_v36  ;;  %v427_v40 = vmul.f32 %v424_v37, %v424_v37  ;;  %v428_v41 = vmul.f32 %v425_v38, %v425_v38 }
 0x2b4   : > { %v429_v42 = vadd.f32 %v427_v40, %v426_v39  ;;  %v430_v43 = vsel %vm387_vm3, %v428_v41, 0.0 }
 0x2b6   : > { %v431_v44 = vadd.f32 %v430_v43, %v429_v42 }
 0x2b8   : > { %432 = vadd.xlane.f32.xlu1 %v431_v44 }
 0x341   : > { %v433_v45 = vpop.xlane.xlu1 %432 }
 0x342   : > { %v435_v46 = vrot.slane %v433_v45, 2  ;;  %v438_v48 = vrot.slane %v433_v45, 4  ;;  %v441_v50 = vrot.slane %v433_v45, 6 }
 0x344   : > { %v437_v47 = vadd.f32 %v435_v46, %v433_v45 }
 0x346   : > { %v440_v49 = vadd.f32 %v438_v48, %v437_v47 }
 0x348   : > { %v443_v51 = vadd.f32 %v441_v50, %v440_v49 }
 0x34a   : > { %v444_v52 = vmul.f32 0.0009765625, %v443_v51 }
 0x34c   : > { %v445_v53 = vadd.f32 1e-05, %v444_v52 }
 0x34e   : > { %700 = vrsqrt.f32 %v445_v53 }
 0x35b   : > { %v701_v54 = vpop.eup %700 }
 0x35c   : > { %v448_v55 = vrot.slane %v701_v54, 6  ;;  %v450_v56 = vrot.slane %v701_v54, 4  ;;  %v452_v57 = vrot.slane %v701_v54, 2 }
 0x35e   : > { %v454_v58 = vsel %vm410_vm5, %v701_v54, %v448_v55 }
 0x35f   : > { %v455_v59 = vsel %vm219_vm4, %v454_v58, %v450_v56 }
 0x360   : > { %v456_v60 = vsel %vm413_vm6, %v455_v59, %v452_v57 }
 0x361   : > { %459 = vperm.xlu0 %699, %v456_v60  }
 0x3dc   : > { %v460_v61 = vpop.permute.xlu0 %459 }
 0x3dd   : > { %v462_v62 = vmul.f32 %v460_v61, %v420_v33  ;;  %v463_v63 = vmul.f32 %v460_v61, %v421_v34  ;;  %v464_v0 = vmul.f32 %v460_v61, %v422_v35 }
 0x3df   : > { %v465_v1 = vmax.f32 %v462_v62, 0.0  ;;  %v466_v2 = vmax.f32 %v463_v63, 0.0  ;;  %v467_v4 = vmax.f32 %v464_v0, 0.0 }
 0x3e1   : > { %v596_v5 = vpack.c.bf16 %v466_v2, %v465_v1  ;;  %v597_v6 = vpack.c.bf16 %v467_v4, %v467_v4 }
 0x3e3   : > { %481 = vst [vmem:[%s172_s19] sm:$0xff] %v596_v5  ;;  %483 = vst.msk [vmem:[%s172_s19 + $0x8] sm:$0xf] %vm482_vm7, %v597_v6 }
 0x3e4   : > { %769 = shalt.err (!%p766_p3)
}
 0x3e5   : > { %s770_s4 = scalar_lea.hbm %s1020_s25, 192  ;;  %s774_s14 = scalar_lea.hbm %s1059_s2, 384 }
 0x3e6   : > { %p771_p11 = scmp.ne.s32.totalorder %s1020_s25, %s770_s4  ;;  %p775_p6 = scmp.lt.s32.totalorder %s1020_s25, %s1059_s2 }
 0x3e7   : > { %p776_p4 = scmp.lt.s32.totalorder %s774_s14, %s770_s4 }
 0x3e8   : > { %p772_p13 = pnand %p771_p11, %p1076_p5 }
 0x3e9   : > { %p777_p8 = por %p776_p4, %p775_p6 }
 0x3ea   : > { %p773_p7 = pneg %p772_p13 }
 0x3ec   : > { %p778_p9 = pnand %p777_p8, %p773_p7 }
 0x3ee   : > { %781 = shalt.err (!%p778_p9)
}
 0x3ef   : > { %626 = dma.vmem_to_hbm [thread:$0]  (%p1076_p5), %s500_s22, 192, %s1020_s25, %s485_s26  }
 0x3f0 PF: > { %s511_s17 = sand.u32 1, %s812_s9   ;;  %p1077_p12 = scmp.ne.s32.totalorder %s1065_s16, 0 }
 0x3f1   : > { %p1078_p10 = scmp.ge.s32.totalorder %s824_s12, 2  ;;  %s512_s5 = scalar_lea.sflag [#allocation4], %s511_s17 }
 0x3f3   : > { %p637_p1 = pnand %p1078_p10, %p1077_p12 }
 0x3f5   : > { %p638_p2 = pneg %p637_p1 }
 0x3f7   : > { %807 = dma.done.wait (%p638_p2), %s512_s5, 192  }
 0x3f8   : > { %809 = vsyncadd (%p638_p2), %s512_s5, 4294967104  ;;  %p16_p0 = scmp.ge.s32.totalorder %s898_s20, 4   ;;  %s1079_s9 = smov %s816_s10 }
 0x3f9   : > { %s1080_s10 = smov %s820_s11  ;;  %s1081_s11 = smov %s925_s28 }
 0x3fa   : > { %s1082_s12 = smov %s898_s20  ;;  %18 = sbr.rel (!%p16_p0) target bundleno = 6 (0x6), region = 77 }
 0x3ff   :  { %517 = vsyncpa [#allocation3], 1 }
 0x400   :  { %519 = vsyncpa [#allocation3 + $0x1], 1 }
 0x401   :  { %520 = vsyncpa [#allocation6], 1 }
 0x402   :  { %521 = vsyncpa [#allocation4], 1 }
 0x403   :  { %523 = vsyncpa [#allocation4 + $0x1], 1 }

</bundles_post_ra>
